<compile_context>
chip_gen: v7x
topology: tpu7x:2x2x1
jax: 0.10.0
libtpu: 0.0.40
codegen_flags: <defaults>
</compile_context>

<pallas_src>
import functools
import math

import jax
import jax.numpy as jnp
from jax.experimental import pallas as pl
from jax.experimental.pallas import tpu as pltpu


# ---------------------------------------------------------------------------
# Phase 1: streaming max over the (folded) T axis.
# ---------------------------------------------------------------------------
def _streaming_max_kernel(frame_ref, pmax_ref, *, steps_per_core, num_t,
                          tile_rows, tail_rows):
    c = pl.program_id(0)                  # core / parallel axis
    t = pl.program_id(1)                  # sequential T-tile axis
    gs = c * steps_per_core + t           # global T-tile index

    @pl.when(t == 0)
    def _init():
        pmax_ref[...] = jnp.full(pmax_ref.shape, -jnp.inf, pmax_ref.dtype)

    @pl.when(gs < num_t)                  # skip clamped overrun steps
    def _fold():
        x = frame_ref[...]                # (B, tile_rows, CF), native dtype
        if tail_rows:                     # static: a ragged tail block exists
            lanes = x.shape[-1]
            row = jax.lax.broadcasted_iota(jnp.int32, (tile_rows, lanes), 0)
            limit = jnp.where(gs == num_t - 1, tail_rows, tile_rows)
            x = jnp.where(row[None, :, :] < limit, x,
                          jnp.array(-jnp.inf, dtype=x.dtype))
        block_max = jnp.max(x, axis=1).astype(pmax_ref.dtype)      # (B, CF)
        pmax_ref[...] = jnp.maximum(pmax_ref[...], block_max[None, :, :])


# ---------------------------------------------------------------------------
# Phase 2: lsep finalize (clipwise term + clip-max term + log1p).
# ---------------------------------------------------------------------------
def _lsep_finalize_kernel(clip_ref, cmax_ref, target_ref, loss_ref,
                          *, w0, w1, batch_size):
    clip = clip_ref[...].astype(jnp.float32)          # (B, C)
    cmax = cmax_ref[...].astype(jnp.float32)          # (B, C)
    tgt = target_ref[...].astype(jnp.float32)         # (B, C)

    pos_mask = (tgt > 0).astype(jnp.float32)          # positive_indices
    neg_mask = (tgt == 0).astype(jnp.float32)         # negative_indices

    def lsep(x):
        # Per-row midpoint shift: cancels exactly in the (neg_sum * pos_sum)
        # product but keeps both exp sums in a safe range.
        m = 0.5 * (jnp.max(x, axis=1, keepdims=True)
                   + jnp.min(x, axis=1, keepdims=True))
        e = jnp.exp(x - m)                            # one EUP exp
        inv_e = pl.reciprocal(e, approx=False)        # exp(m - x)
        neg_sum = jnp.sum(e * neg_mask, axis=1)       # (B,)
        pos_sum = jnp.sum(inv_e * pos_mask, axis=1)   # (B,)
        return jnp.log1p(jnp.sum(neg_sum * pos_sum)) / batch_size

    loss_ref[0, 0] = w0 * lsep(clip) + w1 * lsep(cmax)


# ---------------------------------------------------------------------------
# Tiling helpers.
# ---------------------------------------------------------------------------
def _fold_factor(T, C):
    """Fold factor f so that f*C is a multiple of 128 (if T allows it)."""
    if C % 128 == 0:
        return 1
    f = 128 // math.gcd(C, 128)
    if f > 1 and T % f == 0:
        return f
    return 1


def _pick_tile_rows(T2, B, CF, itemsize, budget_bytes):
    """Largest sublane-aligned tile whose padded VMEM block fits the budget."""
    lanes = pl.cdiv(CF, 128) * 128            # padded lane width in VMEM
    sub = max(8, 32 // itemsize)              # native sublane packing
    bytes_per_row = max(1, B * lanes * itemsize)
    max_rows = max(sub, int(budget_bytes) // bytes_per_row)
    tile = (max_rows // sub) * sub
    if tile >= T2:
        return T2
    # Prefer a divisor of T2 (no masked tail) if one exists near the budget.
    cand = tile
    while cand >= max(sub, tile // 2):
        if T2 % cand == 0:
            return cand
        cand -= sub
    return tile                               # ragged tail masked in-kernel


# ---------------------------------------------------------------------------
# Wrapper.
# ---------------------------------------------------------------------------
def lsep_2way_loss(clipwise, framewise, target, weights=(1.0, 1.0),
                   tile_rows=None, num_cores=None,
                   vmem_budget_bytes=12 * 1024 * 1024,
                   vmem_limit_bytes=48 * 1024 * 1024):
    """Pallas implementation of LSEP2WayLoss.forward (returns a scalar)."""
    B, C = clipwise.shape
    Bf, T, Cf = framewise.shape
    assert (B, C) == (Bf, Cf) == tuple(target.shape)

    itemsize = jnp.dtype(framewise.dtype).itemsize
    sub = max(8, 32 // itemsize)

    # ---- phase 1: streaming max over T ------------------------------------
    f = _fold_factor(T, C)
    T2, CF = T // f, f * C
    frame2 = framewise.reshape(B, T2, CF)     # zero-cost: C is contiguous

    if tile_rows is None:
        tile_rows = _pick_tile_rows(T2, B, CF, itemsize, vmem_budget_bytes)
    tile_rows = min(tile_rows, T2)
    assert tile_rows == T2 or tile_rows % sub == 0, (tile_rows, T2, sub)

    num_t = pl.cdiv(T2, tile_rows)
    tail_rows = T2 % tile_rows if tile_rows < T2 else 0

    if num_cores is None:
        num_cores = 2 if num_t >= 2 else 1    # v7x: 2 TCs; serializes elsewhere
    num_cores = max(1, min(num_cores, num_t))
    steps_per_core = pl.cdiv(num_t, num_cores)

    stream_cost = pl.CostEstimate(
        flops=int(B * T * C),
        transcendentals=0,
        bytes_accessed=int(B * T * C * itemsize + num_cores * B * CF * 4),
    )

    pmax = pl.pallas_call(
        functools.partial(_streaming_max_kernel,
                          steps_per_core=steps_per_core, num_t=num_t,
                          tile_rows=tile_rows, tail_rows=tail_rows),
        out_shape=jax.ShapeDtypeStruct((num_cores, B, CF), jnp.float32),
        grid_spec=pltpu.PrefetchScalarGridSpec(
            num_scalar_prefetch=0,
            grid=(num_cores, steps_per_core),
            in_specs=[pl.BlockSpec(
                (B, tile_rows, CF),
                lambda c, t: (0, jnp.minimum(c * steps_per_core + t,
                                             num_t - 1), 0))],
            out_specs=pl.BlockSpec((1, B, CF), lambda c, t: (c, 0, 0)),
        ),
        compiler_params=pltpu.CompilerParams(
            dimension_semantics=("parallel", "arbitrary"),
            vmem_limit_bytes=int(vmem_limit_bytes),
        ),
        cost_estimate=stream_cost,
    )(frame2)

    # Tiny combine (a few KiB): max over cores, then unfold the lane fold.
    clip_max = jnp.max(pmax, axis=0)                              # (B, f*C)
    if f > 1:
        clip_max = jnp.max(clip_max.reshape(B, f, C), axis=1)     # (B, C)

    # ---- phase 2: lsep finalize -------------------------------------------
    fin_kernel = functools.partial(
        _lsep_finalize_kernel,
        w0=float(weights[0]), w1=float(weights[1]), batch_size=float(B))

    loss = pl.pallas_call(
        fin_kernel,
        out_shape=jax.ShapeDtypeStruct((1, 1), jnp.float32),
        grid_spec=pltpu.PrefetchScalarGridSpec(
            num_scalar_prefetch=0,
            grid=(1,),
            in_specs=[pl.BlockSpec((B, C), lambda i: (0, 0))] * 3,
            out_specs=pl.BlockSpec((1, 1), lambda i: (0, 0),
                                   memory_space=pltpu.SMEM),
        ),
        cost_estimate=pl.CostEstimate(flops=int(20 * B * C),
                                      transcendentals=int(2 * B * C),
                                      bytes_accessed=int(3 * B * C * 4 + 4)),
    )(clipwise, clip_max, target)
    return loss[0, 0]


# ---------------------------------------------------------------------------
# Pure-JAX reference mirroring the PyTorch loops (for correctness check).
# ---------------------------------------------------------------------------
def _reference(clipwise, framewise, target, weights=(1.0, 1.0)):
    tgt = target.astype(jnp.float32)
    pos = (tgt > 0).astype(jnp.float32)
    neg = (tgt == 0).astype(jnp.float32)
    B = clipwise.shape[0]

    def lsep(x):
        x = x.astype(jnp.float32)
        diff = x[:, None, :] - x[:, :, None]          # [i, p, n] -> x_n - x_p
        mask = pos[:, :, None] * neg[:, None, :]
        return jnp.log1p(jnp.sum(jnp.exp(diff) * mask)) / B

    clip_max = jnp.max(framewise, axis=1)
    return weights[0] * lsep(clipwise) + weights[1] * lsep(clip_max)


if __name__ == "__main__":
    base_key = jax.random.PRNGKey(0)

    def run_case(B, T, C, **kw):
        key = jax.random.fold_in(base_key, B * 1000003 + T * 131 + C)
        k1, k2, k3 = jax.random.split(key, 3)
        clipwise = jax.nn.sigmoid(jax.random.normal(k1, (B, C), jnp.float32))
        framewise = jax.nn.sigmoid(jax.random.normal(k2, (B, T, C), jnp.float32))
        target = jax.random.bernoulli(k3, p=0.3, shape=(B, C)).astype(jnp.float32)
        loss = jax.block_until_ready(
            lsep_2way_loss(clipwise, framewise, target, weights=(1.0, 0.5), **kw))
        ref = _reference(clipwise, framewise, target, weights=(1.0, 0.5))
        assert jnp.allclose(loss, ref, rtol=1e-5, atol=1e-5), (B, T, C, loss, ref)

    # Lane-folded path (C=16 -> fold 8, lane dim 128), multi-step T grid with a
    # masked ragged tail (T2=30, tile=8), 2-way core split.
    run_case(4, 240, 16, tile_rows=8, num_cores=2)
    # No-fold path (C already a multiple of 128): masked tail plus a clamped
    # overrun step on the second core (num_t=3, steps_per_core=2).
    run_case(2, 96, 128, tile_rows=40, num_cores=2)
    # Fully automatic tiling / core-count selection.
    run_case(4, 240, 16)

    print("KERNEL_OK")
</pallas_src>

<mosaic_0001>
module attributes {stable_mosaic.version = 11 : i64} {
  func.func @_streaming_max_kernel(%arg0: i32, %arg1: i32, %arg2: memref<4x8x128xf32, #tpu.memory_space<vmem>>, %arg3: memref<1x4x128xf32, #tpu.memory_space<vmem>>) attributes {dimension_semantics = [#tpu.dimension_semantics<parallel>, #tpu.dimension_semantics<arbitrary>], iteration_bounds = array<i64: 2, 2>, scalar_prefetch = 0 : i64, scratch_operands = 0 : i64, tpu.core_type = #tpu.core_type<tc>, window_params = [{transform_indices = @transform_0, window_bounds = array<i64: 4, 8, 128>}, {transform_indices = @transform_1, window_bounds = array<i64: 1, 4, 128>}]} {
    %c2_i32 = arith.constant 2 : i32
    %0 = arith.muli %arg0, %c2_i32 : i32
    %1 = arith.addi %0, %arg1 : i32
    %c0_i32 = arith.constant 0 : i32
    %2 = arith.cmpi eq, %arg1, %c0_i32 : i32
    %3 = arith.extui %2 : i1 to i32
    %c0_i32_0 = arith.constant 0 : i32
    %4 = arith.cmpi ne, %3, %c0_i32_0 : i32
    scf.if %4 {
      %cst = arith.constant 0xFF800000 : f32
      %8 = vector.broadcast %cst : f32 to vector<1x4x128xf32>
      %c0 = arith.constant 0 : index
      %c0_2 = arith.constant 0 : index
      %c0_3 = arith.constant 0 : index
      %9 = vector.load %arg3[%c0, %c0_2, %c0_3] : memref<1x4x128xf32, #tpu.memory_space<vmem>>, vector<1x4x128xf32>
      tpu.vector_store %arg3[%c0, %c0_2, %c0_3], %8 {strides = array<i32>} : memref<1x4x128xf32, #tpu.memory_space<vmem>>, vector<1x4x128xf32>,
    } else {
    }
    %c4_i32 = arith.constant 4 : i32
    %5 = arith.cmpi slt, %1, %c4_i32 : i32
    %6 = arith.extui %5 : i1 to i32
    %c0_i32_1 = arith.constant 0 : i32
    %7 = arith.cmpi ne, %6, %c0_i32_1 : i32
    scf.if %7 {
      %c0 = arith.constant 0 : index
      %c0_2 = arith.constant 0 : index
      %c0_3 = arith.constant 0 : index
      %8 = vector.load %arg2[%c0, %c0_2, %c0_3] : memref<4x8x128xf32, #tpu.memory_space<vmem>>, vector<4x8x128xf32>
      %9 = tpu.iota {dimensions = array<i32: 0>} : vector<8x128xi32>
      %c3_i32 = arith.constant 3 : i32
      %10 = arith.cmpi eq, %1, %c3_i32 : i32
      %c6_i32 = arith.constant 6 : i32
      %c8_i32 = arith.constant 8 : i32
      %11 = arith.select %10, %c6_i32, %c8_i32 : i32
      %12 = vector.shape_cast %9 : vector<8x128xi32> to vector<1x8x128xi32>
      %13 = vector.broadcast %11 : i32 to vector<1x8x128xi32>
      %14 = arith.cmpi slt, %12, %13 : vector<1x8x128xi32>
      %cst = arith.constant 0xFF800000 : f32
      %15 = vector.shape_cast %14 : vector<1x8x128xi1> to vector<1x8x128xi1>
      %16 = vector.broadcast %15 : vector<1x8x128xi1> to vector<4x8x128xi1>
      %17 = vector.broadcast %cst : f32 to vector<4x8x128xf32>
      %18 = arith.select %16, %8, %17 : vector<4x8x128xi1>, vector<4x8x128xf32>
      %cst_4 = arith.constant dense<0xFF800000> : vector<4x128xf32>
      %19 = vector.multi_reduction <maximumf>, %18, %cst_4 [1] : vector<4x8x128xf32> to vector<4x128xf32>
      %c0_5 = arith.constant 0 : index
      %c0_6 = arith.constant 0 : index
      %c0_7 = arith.constant 0 : index
      %20 = vector.load %arg3[%c0_5, %c0_6, %c0_7] : memref<1x4x128xf32, #tpu.memory_space<vmem>>, vector<1x4x128xf32>
      %21 = vector.shape_cast %19 : vector<4x128xf32> to vector<1x4x128xf32>
      %22 = arith.maximumf %20, %21 : vector<1x4x128xf32>
      %c0_8 = arith.constant 0 : index
      %c0_9 = arith.constant 0 : index
      %c0_10 = arith.constant 0 : index
      %23 = vector.load %arg3[%c0_8, %c0_9, %c0_10] : memref<1x4x128xf32, #tpu.memory_space<vmem>>, vector<1x4x128xf32>
      tpu.vector_store %arg3[%c0_8, %c0_9, %c0_10], %22 {strides = array<i32>} : memref<1x4x128xf32, #tpu.memory_space<vmem>>, vector<1x4x128xf32>,
    } else {
    }
    return
  }
  func.func @transform_0(%arg0: i32, %arg1: i32) -> (i32, i32, i32) {
    %c2_i32 = arith.constant 2 : i32
    %0 = arith.muli %arg0, %c2_i32 : i32
    %1 = arith.addi %0, %arg1 : i32
    %c3_i32 = arith.constant 3 : i32
    %2 = arith.minsi %1, %c3_i32 : i32
    %c0_i32 = arith.constant 0 : i32
    %c0_i32_0 = arith.constant 0 : i32
    %c0_i32_1 = arith.constant 0 : i32
    return %c0_i32, %2, %c0_i32_0 : i32, i32, i32
  }
  func.func @transform_1(%arg0: i32, %arg1: i32) -> (i32, i32, i32) {
    %c0_i32 = arith.constant 0 : i32
    %c0_i32_0 = arith.constant 0 : i32
    %c0_i32_1 = arith.constant 0 : i32
    return %arg0, %c0_i32, %c0_i32_0 : i32, i32, i32
  }
}

</mosaic_0001>

<bundles_post_ra>
// kernel: tpu_custom_call.1
= control target key start
LH: loop header
LB: loop body
LE: loop exit
PB: predicated region body
PF: predicated region fallthrough
CT: control target
= control target key end

     0   :  { %6 = vsyncpa [#allocation4], 0  ;;  %s748_s0 = inlined_call_operand.vmem [shape: f32[4,30,128], index: 0, kind: input, shape index: {}]   ;;  %s749_s1 = inlined_call_operand.hbm [shape: f32[2,4,128], index: 1, kind: output, shape index: {}]  }
   0x1   :  { %8 = vsyncpa [#allocation4 + $0x1], 0  ;;  %s575_s6 = smov 0   ;;  %s577_s7 = smov 0  }
   0x2   :  { %s579_s8 = smov 0   ;;  %s581_s9 = smov 0  }
   0x3   :  { %s583_s10 = smov 0   ;;  %s585_s11 = smov 0  }
   0x4   :  { %s587_s12 = smov 0   ;;  %s589_s13 = smov 0  }
   0x5   :  { %s591_s14 = smov 0   ;;  %s593_s15 = smov 0  }
   0x6 LB: > { %s344_s16 = sadd.s32 4294967295, %s561_s15   ;;  %s345_s17 = sadd.s32 4294967294, %s561_s15   ;;  %s561_s15 = sphi %s593_s15, %s14_s15   ;;  %s557_s14 = sphi %s591_s14, %s761_s14   ;;  %s553_s13 = sphi %s589_s13, %s760_s13   ;;  %s549_s12 = sphi %s587_s12, %s759_s12   ;;  %s545_s11 = sphi %s585_s11, %s758_s11   ;;  %s541_s10 = sphi %s583_s10, %s757_s10   ;;  %s537_s9 = sphi %s581_s9, %s756_s9   ;;  %s533_s8 = sphi %s579_s8, %s755_s8   ;;  %s529_s7 = sphi %s577_s7, %s754_s7   ;;  %s525_s6 = sphi %s575_s6, %s753_s6  }
   0x7   : > { %s23_s18 = sadd.s32 1, %s553_s13  ;;  %s26_s19 = sadd.s32 1, %s557_s14 }
   0x8   : > { %p24_p0 = scmp.ge.s32.totalorder %s23_s18, 2  ;;  %s346_s20 = sshll.u32 %s557_s14, 1 }
   0x9   : > { %s31_s21 = sadd.s32 %s553_s13, %s346_s20  ;;  %s41_s22 = sadd.s32 1, %s541_s10 }
   0xa   : > { %s763_s18 = smov (%p24_p0, %s23_s18), 0  ;;  %s765_s19 = smov (!%p24_p0, %s26_s19), %s557_s14 }
   0xb   : > { %p32_p1 = scmp.lt.s32.totalorder %s31_s21, 3  ;;  %p48_p2 = scmp.ne.s32.totalorder %s541_s10, %s537_s9 }
   0xc   : > { %p28_p3 = scmp.ge.s32.totalorder %s765_s19, 2  ;;  %p49_p4 = scmp.eq.s32.totalorder %s561_s15, 0 }
   0xd   : > { %s767_s21 = smov (!%p32_p1, %s31_s21), 3  ;;  %s67_s24 = sadd.s32 1, %s533_s8 }
   0xe   : > { %s769_s19 = smov (%p28_p3, %s765_s19), 0  ;;  %p640_p5 = por %p49_p4, %p48_p2 }
   0xf   : > { %s347_s25 = sshll.u32 %s769_s19, 1  ;;  %s64_s26 = ssub.s32 %s557_s14, %s769_s19 }
  0x10   : > { %s35_s27 = sadd.s32 %s347_s25, %s763_s18  ;;  %p65_p6 = scmp.eq.s32.totalorder %s64_s26, 0 }
  0x11   : > { %p36_p7 = scmp.lt.s32.totalorder %s35_s27, 3  ;;  %p77_p8 = scmp.ne.s32.totalorder %s533_s8, %s529_s7 }
  0x12   : > { %s652_s28 = scalar_select %p65_p6, %s533_s8, %s67_s24  }
  0x13   : > { %s771_s27 = smov (!%p36_p7, %s35_s27), 3  ;;  %p78_p9 = scmp.eq.s32.totalorder %s344_s16, 3 }
  0x14   : > { %p83_p10 = scmp.ne.s32.totalorder %s529_s7, %s525_s6  ;;  %s38_s29 = ssub.s32 %s767_s21, %s771_s27 }
  0x15   : > { %p84_p11 = scmp.eq.s32.totalorder %s345_s17, 3  ;;  %p39_p12 = scmp.eq.s32.totalorder %s38_s29, 0 }
  0x16   : > { %p656_p13 = por %p78_p9, %p77_p8  ;;  %p349_p1 = scmp.ge.s32.totalorder %s561_s15, 4 }
  0x17   : > { %p660_p0 = por %p84_p11, %p83_p10 }
  0x18   : > { %s665_s3 = scalar_select %p39_p12, %s541_s10, %s41_s22  }
  0x19   : > { %100 = sbr.rel (%p349_p1) target bundleno = 40 (0x28), region = 16 }
  0x20   : > { %103 = sbr.rel (!%p640_p5) target bundleno = 40 (0x28), region = 20  ;;  %s105_s4 = sand.u32 (%p640_p5), 1, %s541_s10  }
  0x21   : > { %s352_s5 = sshll.u32 (%p640_p5), %s767_s21, 3  ;;  %s350_s16 = sshll.u32 (%p640_p5), %s105_s4, 5 }
  0x22   : > { %s113_s24 = scalar_lea.vmem (%p640_p5), %s748_s0, %s352_s5  ;;  %s107_s25 = scalar_lea.vmem (%p640_p5), [#allocation2], %s350_s16 }
  0x23   : > { %v147_v0 = vld [vmem:[%s113_s24] sm:$0xff] (%p640_p5) }
  0x24   : > { %v149_v1 = vld [vmem:[%s113_s24 + $0x20] sm:$0xff] (%p640_p5)  ;;  %148 = vst [vmem:[%s107_s25] sm:$0xff] (%p640_p5), %v147_v0 }
  0x25   : > { %v151_v2 = vld [vmem:[%s113_s24 + $0x40] sm:$0xff] (%p640_p5)  ;;  %150 = vst [vmem:[%s107_s25 + $0x8] sm:$0xff] (%p640_p5), %v149_v1 }
  0x26   : > { %152 = vst [vmem:[%s107_s25 + $0x10] sm:$0xff] (%p640_p5), %v151_v2  ;;  %v153_v3 = vld [vmem:[%s113_s24 + $0x60] sm:$0xff] (%p640_p5) }
  0x27   : > { %154 = vst [vmem:[%s107_s25 + $0x18] sm:$0xff] %v153_v3 }
  0x28 PF: > { %p353_p2 = scmp.ge.s32.totalorder %s561_s15, 1  ;;  %p159_p3 = scmp.lt.s32.totalorder %s561_s15, 5 }
  0x2a   : > { %p160_p4 = pnand %p353_p2, %p159_p3 }
  0x2b   : > { %s166_s21 = sand.u32 (!%p160_p4), 1, %s537_s9   ;;  %s182_s22 = sand.u32 (!%p160_p4), 1, %s529_s7  }
  0x2c   : > { %163 = sbr.rel (%p160_p4) target bundleno = 114 (0x72), region = 58  ;;  %s354_s23 = sshll.u32 (!%p160_p4), %s166_s21, 5 }
  0x2d   : > { %s355_s26 = sshll.u32 (!%p160_p4), %s182_s22, 2  ;;  %s356_s27 = sshll.u32 (!%p160_p4), %s549_s12, 1 }
  0x2e   : > { %s190_s29 = sadd.s32 (!%p160_p4), %s545_s11, %s356_s27  ;;  %s168_s4 = scalar_lea.vmem (!%p160_p4), [#allocation2], %s354_s23 }
  0x2f   : > { %s682_s5 = scalar_lea.vmem (!%p160_p4), [#allocation3], %s355_s26  ;;  %p357_p5 = scmp.ne.s32.totalorder (!%p160_p4), %s545_s11, 0 }
  0x33   : > { %194 = sbr.rel (%p357_p5) target bundleno = 58 (0x3a), region = 66  ;;  %v563_v4 = vmov (!%p357_p5), -inf  }
  0x34   : > { %195 = vst [vmem:[%s682_s5] sm:$0xf] (!%p357_p5), %v563_v4 }
  0x3a PF: > { %p358_p6 = scmp.ge.s32.totalorder %s190_s29, 4 }
  0x3b   : > { %v204_v5 = vlaneseq (!%p358_p6)  ;;  %p206_p7 = scmp.eq.s32.totalorder (!%p358_p6), %s190_s29, 3  ;;  %v200_v6 = vld [vmem:[%s168_s4] sm:$0xff] (!%p358_p6)  ;;  %v201_v8 = vld [vmem:[%s168_s4 + $0x8] sm:$0xff] (!%p358_p6)  ;;  %v202_v9 = vld [vmem:[%s168_s4 + $0x10] sm:$0xff] (!%p358_p6)  ;;  %vm245_vm1 = vcmask (!%p358_p6), 1041409   ;;  %vm247_vm2 = vcmask (!%p358_p6), 1042434  }
  0x3c   : > { %199 = sbr.rel (%p358_p6) target bundleno = 90 (0x5a), region = 70  ;;  %v203_v10 = vld [vmem:[%s168_s4 + $0x18] sm:$0xff] (!%p358_p6)  ;;  %vm249_vm3 = vcmask (!%p358_p6), 1043459   ;;  %v240_v40 = vld [vmem:[%s682_s5] sm:$0xf] (!%p358_p6) }
  0x3d   : > { %v205_v7 = vshrl.u32 (!%p358_p6), %v204_v5, 7 }
  0x43   : > { %s207_s9 = scalar_select %p206_p7, 6, 8 }
  0x45   : > { %v208_v11 = vstv %s207_s9 }
  0x46   : > { %vm209_vm0 = vcmp.lt.s32.totalorder %v205_v7, %v208_v11 }
  0x47   : > { %v212_v12 = vsel %vm209_vm0, %v200_v6, -inf  ;;  %v213_v13 = vsel %vm209_vm0, %v201_v8, -inf  ;;  %v214_v14 = vsel %vm209_vm0, %v202_v9, -inf  ;;  %v215_v15 = vsel %vm209_vm0, %v203_v10, -inf }
  0x48   : > { %v216_v16 = vrot.slane %v212_v12, 4  ;;  %v222_v17 = vrot.slane %v213_v13, 4  ;;  %v228_v18 = vrot.slane %v214_v14, 4  ;;  %v234_v19 = vrot.slane %v215_v15, 4 }
  0x4a   : > { %v217_v20 = vmax.f32 %v212_v12, %v216_v16  ;;  %v223_v21 = vmax.f32 %v213_v13, %v222_v17  ;;  %v229_v22 = vmax.f32 %v214_v14, %v228_v18  ;;  %v235_v23 = vmax.f32 %v215_v15, %v234_v19 }
  0x4c   : > { %v218_v24 = vrot.slane %v217_v20, 2  ;;  %v224_v25 = vrot.slane %v223_v21, 2  ;;  %v230_v26 = vrot.slane %v229_v22, 2  ;;  %v236_v27 = vrot.slane %v235_v23, 2 }
  0x4e   : > { %v219_v28 = vmax.f32 %v217_v20, %v218_v24  ;;  %v225_v29 = vmax.f32 %v223_v21, %v224_v25  ;;  %v231_v30 = vmax.f32 %v229_v22, %v230_v26  ;;  %v237_v31 = vmax.f32 %v235_v23, %v236_v27 }
  0x50   : > { %v220_v32 = vrot.slane %v219_v28, 1  ;;  %v226_v33 = vrot.slane %v225_v29, 1  ;;  %v232_v34 = vrot.slane %v231_v30, 1  ;;  %v238_v35 = vrot.slane %v237_v31, 1 }
  0x52   : > { %v221_v36 = vmax.f32 %v219_v28, %v220_v32  ;;  %v227_v37 = vmax.f32 %v225_v29, %v226_v33  ;;  %v233_v38 = vmax.f32 %v231_v30, %v232_v34  ;;  %v239_v39 = vmax.f32 %v237_v31, %v238_v35 }
  0x54   : > { %v246_v41 = vsel %vm245_vm1, %v227_v37, %v221_v36 }
  0x55   : > { %v248_v42 = vsel %vm247_vm2, %v233_v38, %v246_v41 }
  0x56   : > { %v250_v43 = vsel %vm249_vm3, %v239_v39, %v248_v42 }
  0x57   : > { %v252_v44 = vmax.f32 %v240_v40, %v250_v43 }
  0x59   : > { %253 = vst [vmem:[%s682_s5] sm:$0xf] %v252_v44 }
  0x5a PF: > { %s360_s11 = sshll.u32 %s549_s12, 6  ;;  %s268_s24 = sshll.u32 %s682_s5, 4  ;;  %s269_s24 = int_to_ptr.vmem [resolvable:$true] %s268_s24 }
  0x5b   : > { %s692_s20 = scalar_lea.hbm %s749_s1, %s360_s11  ;;  %s255_s25 = scalar_lea.sflag [#allocation4], %s182_s22 }
  0x5c   : > { %s451_s21 = scalar_lea.vmem %s269_s24, 64  ;;  %s564_s23 = smov [#allocation3]  }
  0x5d   : > { %p452_p8 = scmp.ne.s32.totalorder %s269_s24, %s451_s21  ;;  %s455_s26 = sshll.u32 %s564_s23, 4  ;;  %s456_s26 = int_to_ptr.vmem [resolvable:$false] %s455_s26 }
  0x5e   : > { %s457_s27 = scalar_lea.vmem %s456_s26, 128  ;;  %p458_p11 = scmp.lt.s32.totalorder %s269_s24, %s456_s26 }
  0x5f   : > { %p453_p9 = pnand %p452_p8, %p656_p13  ;;  %p459_p12 = scmp.lt.s32.totalorder %s457_s27, %s451_s21 }
  0x61   : > { %p454_p10 = pneg %p453_p9  ;;  %p460_p1 = por %p459_p12, %p458_p11 }
  0x63   : > { %p461_p2 = pnand %p460_p1, %p454_p10 }
  0x65   : > { %464 = shalt.err (!%p461_p2)
}
  0x66   : > { %s465_s12 = scalar_lea.hbm %s692_s20, 64  ;;  %s469_s4 = scalar_lea.hbm %s749_s1, 128 }
  0x67   : > { %p466_p3 = scmp.ne.s32.totalorder %s692_s20, %s465_s12  ;;  %p470_p6 = scmp.lt.u32.totalorder %s692_s20, %s749_s1 }
  0x68   : > { %p471_p7 = scmp.lt.u32.totalorder %s469_s4, %s465_s12  ;;  %p473_p9 = scmp.lt.u32.totalorder %s465_s12, %s692_s20 }
  0x69   : > { %p467_p4 = pnand %p466_p3, %p656_p13 }
  0x6a   : > { %p472_p8 = por %p471_p7, %p470_p6 }
  0x6b   : > { %p468_p5 = pneg %p467_p4 }
  0x6c   : > { %p474_p10 = por %p473_p9, %p472_p8 }
  0x6e   : > { %p475_p11 = pnand %p474_p10, %p468_p5 }
  0x70   : > { %478 = shalt.err (!%p475_p11)
}
  0x71   : > { %363 = dma.vmem_to_hbm [thread:$0]  (%p656_p13), %s269_s24, 64, %s692_s20, %s255_s25  }
  0x72 PF: > { %p369_p12 = scmp.ge.s32.totalorder %s561_s15, 2  ;;  %s280_s11 = sand.u32 1, %s525_s6  }
  0x73   : > { %s281_s16 = scalar_lea.sflag [#allocation4], %s280_s11 }
  0x74   : > { %p366_p1 = pnand %p369_p12, %p660_p0 }
  0x76   : > { %520 = dma.done.wait (!%p366_p1), %s281_s16, 64  }
  0x77   : > { %522 = vsyncadd (!%p366_p1), %s281_s16, 4294967232  ;;  %s14_s15 = sadd.s32 1, %s561_s15   ;;  %s753_s6 = smov %s529_s7 }
  0x78   : > { %p11_p2 = scmp.ge.s32.totalorder %s14_s15, 6   ;;  %s754_s7 = smov %s533_s8 }
  0x79   : > { %s755_s8 = smov %s652_s28  ;;  %s756_s9 = smov %s541_s10 }
  0x7a   : > { %s757_s10 = smov %s665_s3  ;;  %s758_s11 = smov %s553_s13 }
  0x7b   : > { %s759_s12 = smov %s557_s14  ;;  %s760_s13 = smov %s763_s18 }
  0x7c   : > { %s761_s14 = smov %s769_s19  ;;  %13 = sbr.rel (!%p11_p2) target bundleno = 6 (0x6), region = 110 }
  0x83   :  { %286 = vsyncpa [#allocation4], 1 }
  0x84   :  { %288 = vsyncpa [#allocation4 + $0x1], 1 }

</bundles_post_ra>
